<compile_context>
chip_gen: v7x
topology: tpu7x:2x2x1
jax: 0.10.0
libtpu: 0.0.40
codegen_flags: <defaults>
</compile_context>

<pallas_src>
import functools

import jax
import jax.numpy as jnp
from jax.experimental import pallas as pl
from jax.experimental.pallas import tpu as pltpu

_LANES = 128
_TILE_BYTES = 4 << 20      # ~4 MiB of input bytes per operand per grid step
_CHUNK_BYTES = 512 << 10   # ~0.5 MiB of f32 temporaries per inner-loop chunk
_MAX_CHUNKS_PER_TILE = 16  # bound for the unrolled inner loop


def _round_up(x, m):
    return ((x + m - 1) // m) * m


def _num_tensorcores():
    """TensorCores behind one JAX device (v7x / megacore -> 2, else 1)."""
    try:
        kind = jax.devices()[0].device_kind.lower()
    except Exception:  # pragma: no cover - be conservative off-TPU
        return 1
    # TODO(synk): confirm on v7x (bundle dump / xprof) that the leading
    # "parallel" axis really shards across both TensorCores; if one TC idles,
    # switch that axis to pltpu.CORE_PARALLEL.
    if "v7" in kind or "v4" in kind or "v5p" in kind:
        return 2
    return 1


def _tile_plan(rows, lanes, in_itemsize):
    """Choose (tile_rows, chunk_rows, acc_rows) for an (rows, lanes) slab."""
    sub = {4: 8, 2: 16, 1: 32}.get(in_itemsize, 8)  # packed sublane granule
    if rows < sub:
        # Single block equal to the full (small) row extent is always legal.
        return rows, rows, rows
    # Inner-loop chunk: ~_CHUNK_BYTES of f32 temporaries, sublane aligned.
    chunk_rows = max(sub, min(1024, (_CHUNK_BYTES // (lanes * 4)) // sub * sub))
    chunk_rows = min(chunk_rows, _round_up(rows, sub))
    # Grid-step block: a few chunks, targeting ~_TILE_BYTES of input bytes.
    chunks_per_tile = max(
        1, min(_MAX_CHUNKS_PER_TILE,
               _TILE_BYTES // (chunk_rows * lanes * in_itemsize)))
    tile_rows = chunk_rows * chunks_per_tile
    tile_rows = min(tile_rows, _round_up(rows, chunk_rows))
    return tile_rows, chunk_rows, 8


def _mse_partial_kernel(o_ref, t_ref, out_ref, *, tile_rows, chunk_rows,
                        acc_rows, steps, valid_rows, lanes):
    c = pl.program_id(0)   # TensorCore slot ("parallel" axis)
    j = pl.program_id(1)   # reduction step ("arbitrary" axis)

    @pl.when(j == 0)
    def _():
        out_ref[...] = jnp.zeros_like(out_ref)

    # Global (unclamped) first row of this block.  Rows at/after `valid_rows`
    # are either Pallas edge padding (garbage) or duplicated clamped blocks
    # from the core split; only those blocks take the masked path.
    row_base = (c * steps + j) * tile_rows
    n_chunks = tile_rows // chunk_rows

    def accumulate(mask_rows):
        def body(i, carry):
            r0 = pl.multiple_of(i * chunk_rows, chunk_rows)
            d = (o_ref[pl.ds(r0, chunk_rows), :].astype(jnp.float32)
                 - t_ref[pl.ds(r0, chunk_rows), :].astype(jnp.float32))
            if mask_rows:
                rid = (row_base + r0
                       + jax.lax.broadcasted_iota(jnp.int32, (chunk_rows, 1), 0))
                d = jnp.where(rid < valid_rows, d, 0.0)
            sq = d * d
            # Pure-VPU accumulation into the vreg-shaped resident output block.
            out_ref[...] += jnp.sum(
                sq.reshape(chunk_rows // acc_rows, acc_rows, lanes), axis=0
            ).reshape(1, acc_rows, lanes)
            return carry

        jax.lax.fori_loop(0, n_chunks, body, 0, unroll=True)

    interior = row_base + tile_rows <= valid_rows

    @pl.when(interior)
    def _():
        accumulate(mask_rows=False)

    @pl.when(jnp.logical_not(interior))
    def _():
        accumulate(mask_rows=True)


def _sum_squared_diff(o2d, t2d, in_itemsize):
    """Pallas partial-sum kernel over a 2-D (rows, lanes) slab -> scalar SSE."""
    rows, lanes = o2d.shape
    tile_rows, chunk_rows, acc_rows = _tile_plan(rows, lanes, in_itemsize)
    blocks_total = pl.cdiv(rows, tile_rows)
    ncores = _num_tensorcores() if blocks_total > 1 else 1
    steps = pl.cdiv(blocks_total, ncores)

    def in_map(c, j):
        # Clamp so duplicated tail blocks on the second core stay in bounds;
        # their contribution is masked to zero inside the kernel.
        return (jnp.minimum(c * steps + j, blocks_total - 1), 0)

    kernel = functools.partial(
        _mse_partial_kernel,
        tile_rows=tile_rows, chunk_rows=chunk_rows, acc_rows=acc_rows,
        steps=steps, valid_rows=rows, lanes=lanes)

    n_elems = rows * lanes
    cost = pl.CostEstimate(
        flops=3 * n_elems,
        transcendentals=0,
        bytes_accessed=2 * n_elems * in_itemsize + ncores * acc_rows * lanes * 4)

    partials = pl.pallas_call(
        kernel,
        out_shape=jax.ShapeDtypeStruct((ncores, acc_rows, lanes), jnp.float32),
        grid_spec=pltpu.PrefetchScalarGridSpec(
            num_scalar_prefetch=0,
            grid=(ncores, steps),
            in_specs=[
                pl.BlockSpec((tile_rows, lanes), in_map),
                pl.BlockSpec((tile_rows, lanes), in_map),
            ],
            out_specs=pl.BlockSpec((1, acc_rows, lanes), lambda c, j: (c, 0, 0)),
        ),
        compiler_params=pltpu.CompilerParams(
            dimension_semantics=("parallel", "arbitrary"),
            vmem_limit_bytes=32 * 1024 * 1024,
        ),
        cost_estimate=cost,
    )(o2d, t2d)

    # Final tiny cross-lane/sublane reduction in XLA.
    return jnp.sum(partials)


def mse_loss(output, target):
    """Pallas TPU implementation of nn.MSELoss() (mean reduction)."""
    assert output.shape == target.shape, "MSELoss requires matching shapes"
    n_valid = output.size
    assert n_valid > 0, "MSELoss on empty tensors is undefined"

    in_itemsize = max(jnp.dtype(output.dtype).itemsize,
                      jnp.dtype(target.dtype).itemsize)

    tail_sse = None
    native_ok = (output.ndim >= 2
                 and output.shape[-1] * 8 * in_itemsize <= _TILE_BYTES)
    if native_ok:
        # Copy-free path: collapse leading dims, keep the native minor dim as
        # the lane dimension (no HBM relayout, no pad, no tail).
        lanes = output.shape[-1]
        rows = n_valid // lanes
        o2d = output.reshape(rows, lanes)
        t2d = target.reshape(rows, lanes)
        sse = _sum_squared_diff(o2d, t2d, in_itemsize)
    else:
        # Fallback: flatten to (rows, 128) and handle the <128-element ragged
        # tail with a tiny XLA slice+sum instead of padding (no full-array
        # pad copy).
        # TODO(synk): this flatten can still relayout unaligned minor dims in
        # HBM (1-D inputs or very large unaligned last dims); a fully
        # copy-free version would need a manual-DMA strided-gather kernel.
        o_flat = output.reshape(-1)
        t_flat = target.reshape(-1)
        body = (n_valid // _LANES) * _LANES
        if body < n_valid:
            d_tail = (o_flat[body:].astype(jnp.float32)
                      - t_flat[body:].astype(jnp.float32))
            tail_sse = jnp.sum(d_tail * d_tail)
        if body > 0:
            rows = body // _LANES
            o2d = o_flat[:body].reshape(rows, _LANES)
            t2d = t_flat[:body].reshape(rows, _LANES)
            sse = _sum_squared_diff(o2d, t2d, in_itemsize)
            if tail_sse is not None:
                sse = sse + tail_sse
        else:
            sse = tail_sse

    # Mean: compute the reciprocal of the exact element count in double
    # precision (Python float) before rounding to f32, so very large n
    # (> 2^24) does not lose precision in the divisor itself.
    inv_n = 1.0 / float(n_valid)
    return (sse * inv_n).astype(jnp.float32)


if __name__ == "__main__":
    key = jax.random.PRNGKey(0)
    k1, k2 = jax.random.split(key)
    # Small shapes consistent with a dense regression output, NCHW-like.
    output = jax.random.normal(k1, (2, 4, 16, 16), dtype=jnp.float32)
    target = jax.random.normal(k2, (2, 4, 16, 16), dtype=jnp.float32)

    loss = mse_loss(output, target)
    jax.block_until_ready(loss)

    # Cross-check against plain-JAX reference (same semantics as nn.MSELoss).
    ref = jnp.mean((output - target) ** 2)
    assert jnp.allclose(loss, ref, rtol=1e-6, atol=1e-6), (loss, ref)

    print("KERNEL_OK")
</pallas_src>

<mosaic_0001>
module attributes {stable_mosaic.version = 11 : i64} {
  func.func @_mse_partial_kernel(%arg0: i32, %arg1: i32, %arg2: memref<128x16xf32, #tpu.memory_space<vmem>>, %arg3: memref<128x16xf32, #tpu.memory_space<vmem>>, %arg4: memref<1x8x16xf32, #tpu.memory_space<vmem>>) attributes {dimension_semantics = [#tpu.dimension_semantics<parallel>, #tpu.dimension_semantics<arbitrary>], iteration_bounds = array<i64: 1, 1>, scalar_prefetch = 0 : i64, scratch_operands = 0 : i64, tpu.core_type = #tpu.core_type<tc>, window_params = [{transform_indices = @transform_0, window_bounds = array<i64: 128, 16>}, {transform_indices = @transform_1, window_bounds = array<i64: 128, 16>}, {transform_indices = @transform_2, window_bounds = array<i64: 1, 8, 16>}]} {
    %c0_i32 = arith.constant 0 : i32
    %0 = arith.cmpi eq, %arg1, %c0_i32 : i32
    %1 = arith.extui %0 : i1 to i32
    %c0_i32_0 = arith.constant 0 : i32
    %2 = arith.cmpi ne, %1, %c0_i32_0 : i32
    scf.if %2 {
      %cst = arith.constant 0.000000e+00 : f32
      %13 = vector.broadcast %cst : f32 to vector<1x8x16xf32>
      %c0 = arith.constant 0 : index
      %c0_5 = arith.constant 0 : index
      %c0_6 = arith.constant 0 : index
      %14 = vector.load %arg4[%c0, %c0_5, %c0_6] : memref<1x8x16xf32, #tpu.memory_space<vmem>>, vector<1x8x16xf32>
      tpu.vector_store %arg4[%c0, %c0_5, %c0_6], %13 {strides = array<i32>} : memref<1x8x16xf32, #tpu.memory_space<vmem>>, vector<1x8x16xf32>,
    } else {
    }
    %c1_i32 = arith.constant 1 : i32
    %3 = arith.muli %arg0, %c1_i32 : i32
    %4 = arith.addi %3, %arg1 : i32
    %c128_i32 = arith.constant 128 : i32
    %5 = arith.muli %4, %c128_i32 : i32
    %c128_i32_1 = arith.constant 128 : i32
    %6 = arith.addi %5, %c128_i32_1 : i32
    %c128_i32_2 = arith.constant 128 : i32
    %7 = arith.cmpi sle, %6, %c128_i32_2 : i32
    %8 = arith.extui %7 : i1 to i32
    %c0_i32_3 = arith.constant 0 : i32
    %9 = arith.cmpi ne, %8, %c0_i32_3 : i32
    scf.if %9 {
      %c0_i32_5 = arith.constant 0 : i32
      %c128_i32_6 = arith.constant 128 : i32
      %13 = arith.muli %c0_i32_5, %c128_i32_6 : i32
      %14 = tpu.assume_multiple %13, 128 : i32
      %15 = arith.index_cast %14 : i32 to index
      %c0 = arith.constant 0 : index
      %16 = vector.load %arg2[%15, %c0] : memref<128x16xf32, #tpu.memory_space<vmem>>, vector<128x16xf32>
      %17 = arith.index_cast %14 : i32 to index
      %c0_7 = arith.constant 0 : index
      %18 = vector.load %arg3[%17, %c0_7] : memref<128x16xf32, #tpu.memory_space<vmem>>, vector<128x16xf32>
      %19 = arith.subf %16, %18 : vector<128x16xf32>
      %20 = arith.mulf %19, %19 : vector<128x16xf32>
      %c0_8 = arith.constant 0 : index
      %c0_9 = arith.constant 0 : index
      %c0_10 = arith.constant 0 : index
      %21 = vector.load %arg4[%c0_8, %c0_9, %c0_10] : memref<1x8x16xf32, #tpu.memory_space<vmem>>, vector<1x8x16xf32>
      %22 = vector.shape_cast %20 : vector<128x16xf32> to vector<16x8x16xf32>
      %cst = arith.constant dense<0.000000e+00> : vector<8x16xf32>
      %23 = vector.multi_reduction <add>, %22, %cst [0] : vector<16x8x16xf32> to vector<8x16xf32>
      %24 = vector.shape_cast %23 : vector<8x16xf32> to vector<1x8x16xf32>
      %25 = arith.addf %21, %24 : vector<1x8x16xf32>
      %c0_11 = arith.constant 0 : index
      %c0_12 = arith.constant 0 : index
      %c0_13 = arith.constant 0 : index
      %26 = vector.load %arg4[%c0_11, %c0_12, %c0_13] : memref<1x8x16xf32, #tpu.memory_space<vmem>>, vector<1x8x16xf32>
      tpu.vector_store %arg4[%c0_11, %c0_12, %c0_13], %25 {strides = array<i32>} : memref<1x8x16xf32, #tpu.memory_space<vmem>>, vector<1x8x16xf32>,
      %c1_i32_14 = arith.constant 1 : i32
    } else {
    }
    %true = arith.constant true
    %10 = arith.xori %7, %true : i1
    %11 = arith.extui %10 : i1 to i32
    %c0_i32_4 = arith.constant 0 : i32
    %12 = arith.cmpi ne, %11, %c0_i32_4 : i32
    scf.if %12 {
      %c0_i32_5 = arith.constant 0 : i32
      %c128_i32_6 = arith.constant 128 : i32
      %13 = arith.muli %c0_i32_5, %c128_i32_6 : i32
      %14 = tpu.assume_multiple %13, 128 : i32
      %15 = arith.index_cast %14 : i32 to index
      %c0 = arith.constant 0 : index
      %16 = vector.load %arg2[%15, %c0] : memref<128x16xf32, #tpu.memory_space<vmem>>, vector<128x16xf32>
      %17 = arith.index_cast %14 : i32 to index
      %c0_7 = arith.constant 0 : index
      %18 = vector.load %arg3[%17, %c0_7] : memref<128x16xf32, #tpu.memory_space<vmem>>, vector<128x16xf32>
      %19 = arith.subf %16, %18 : vector<128x16xf32>
      %20 = arith.addi %5, %14 : i32
      %21 = tpu.iota {dimensions = array<i32: 0>} : vector<128x1xi32>
      %22 = vector.broadcast %20 : i32 to vector<128x1xi32>
      %23 = arith.addi %22, %21 : vector<128x1xi32>
      %c128_i32_8 = arith.constant 128 : i32
      %24 = vector.broadcast %c128_i32_8 : i32 to vector<128x1xi32>
      %25 = arith.cmpi slt, %23, %24 : vector<128x1xi32>
      %cst = arith.constant 0.000000e+00 : f32
      %26 = vector.shape_cast %25 : vector<128x1xi1> to vector<128x1xi1>
      %27 = vector.broadcast %26 : vector<128x1xi1> to vector<128x16xi1>
      %28 = vector.broadcast %cst : f32 to vector<128x16xf32>
      %29 = arith.select %27, %19, %28 : vector<128x16xi1>, vector<128x16xf32>
      %30 = arith.mulf %29, %29 : vector<128x16xf32>
      %c0_9 = arith.constant 0 : index
      %c0_10 = arith.constant 0 : index
      %c0_11 = arith.constant 0 : index
      %31 = vector.load %arg4[%c0_9, %c0_10, %c0_11] : memref<1x8x16xf32, #tpu.memory_space<vmem>>, vector<1x8x16xf32>
      %32 = vector.shape_cast %30 : vector<128x16xf32> to vector<16x8x16xf32>
      %cst_12 = arith.constant dense<0.000000e+00> : vector<8x16xf32>
      %33 = vector.multi_reduction <add>, %32, %cst_12 [0] : vector<16x8x16xf32> to vector<8x16xf32>
      %34 = vector.shape_cast %33 : vector<8x16xf32> to vector<1x8x16xf32>
      %35 = arith.addf %31, %34 : vector<1x8x16xf32>
      %c0_13 = arith.constant 0 : index
      %c0_14 = arith.constant 0 : index
      %c0_15 = arith.constant 0 : index
      %36 = vector.load %arg4[%c0_13, %c0_14, %c0_15] : memref<1x8x16xf32, #tpu.memory_space<vmem>>, vector<1x8x16xf32>
      tpu.vector_store %arg4[%c0_13, %c0_14, %c0_15], %35 {strides = array<i32>} : memref<1x8x16xf32, #tpu.memory_space<vmem>>, vector<1x8x16xf32>,
      %c1_i32_16 = arith.constant 1 : i32
    } else {
    }
    return
  }
  func.func @transform_0(%arg0: i32, %arg1: i32) -> (i32, i32) {
    %c1_i32 = arith.constant 1 : i32
    %0 = arith.muli %arg0, %c1_i32 : i32
    %1 = arith.addi %0, %arg1 : i32
    %c0_i32 = arith.constant 0 : i32
    %2 = arith.minsi %1, %c0_i32 : i32
    %c0_i32_0 = arith.constant 0 : i32
    %c0_i32_1 = arith.constant 0 : i32
    return %2, %c0_i32_0 : i32, i32
  }
  func.func @transform_1(%arg0: i32, %arg1: i32) -> (i32, i32) {
    %c1_i32 = arith.constant 1 : i32
    %0 = arith.muli %arg0, %c1_i32 : i32
    %1 = arith.addi %0, %arg1 : i32
    %c0_i32 = arith.constant 0 : i32
    %2 = arith.minsi %1, %c0_i32 : i32
    %c0_i32_0 = arith.constant 0 : i32
    %c0_i32_1 = arith.constant 0 : i32
    return %2, %c0_i32_0 : i32, i32
  }
  func.func @transform_2(%arg0: i32, %arg1: i32) -> (i32, i32, i32) {
    %c0_i32 = arith.constant 0 : i32
    %c0_i32_0 = arith.constant 0 : i32
    %c0_i32_1 = arith.constant 0 : i32
    return %arg0, %c0_i32, %c0_i32_0 : i32, i32, i32
  }
}

</mosaic_0001>

<bundles_post_ra>
// kernel: tpu_custom_call.1
= control target key start
LH: loop header
LB: loop body
LE: loop exit
PB: predicated region body
PF: predicated region fallthrough
CT: control target
= control target key end

     0   :  { %vm80_vm0 = vcmask 130048   ;;  %v442_v0 = vmov 0.0   ;;  %s585_s0 = inlined_call_operand.vmem [shape: f32[128,16], index: 0, kind: input, shape index: {}]   ;;  %s586_s1 = inlined_call_operand.vmem [shape: f32[128,16], index: 1, kind: input, shape index: {}]   ;;  %s587_s2 = inlined_call_operand.hbm [shape: f32[1,8,16], index: 2, kind: output, shape index: {}]  }
   0x1   :  { %81 = vst.msk [vmem:[#allocation2] sm:$0xff] %vm80_vm0, %v442_v0  ;;  %v89_v1 = vld [vmem:[%s585_s0] sm:$0xff]  ;;  %v90_v2 = vld [vmem:[%s585_s0 + $0x8] sm:$0xff]  ;;  %v91_v3 = vld [vmem:[%s585_s0 + $0x10] sm:$0xff] }
   0x2   :  { %v105_v4 = vld [vmem:[%s586_s1] sm:$0xff]  ;;  %v106_v5 = vld [vmem:[%s586_s1 + $0x8] sm:$0xff]  ;;  %v92_v6 = vld [vmem:[%s585_s0 + $0x18] sm:$0xff] }
   0x3   :  { %v107_v7 = vld [vmem:[%s586_s1 + $0x10] sm:$0xff]  ;;  %v108_v8 = vld [vmem:[%s586_s1 + $0x18] sm:$0xff]  ;;  %v121_v9 = vsub.f32 %v89_v1, %v105_v4  ;;  %v122_v10 = vsub.f32 %v90_v2, %v106_v5  ;;  %v93_v12 = vld [vmem:[%s585_s0 + $0x20] sm:$0xff] }
   0x4   :  { %v123_v11 = vsub.f32 %v91_v3, %v107_v7  ;;  %v109_v13 = vld [vmem:[%s586_s1 + $0x20] sm:$0xff]  ;;  %v124_v14 = vsub.f32 %v92_v6, %v108_v8  ;;  %v94_v15 = vld [vmem:[%s585_s0 + $0x28] sm:$0xff] }
   0x5   :  { %v110_v16 = vld [vmem:[%s586_s1 + $0x28] sm:$0xff]  ;;  %v137_v17 = vmul.f32 %v121_v9, %v121_v9  ;;  %v125_v18 = vsub.f32 %v93_v12, %v109_v13  ;;  %v138_v19 = vmul.f32 %v122_v10, %v122_v10 }
   0x6   :  { %v139_v20 = vmul.f32 %v123_v11, %v123_v11 }
   0x7   :  { %7 = vsyncpa [#allocation3], 0  ;;  %v95_v21 = vld [vmem:[%s585_s0 + $0x30] sm:$0xff]  ;;  %v126_v23 = vsub.f32 %v94_v15, %v110_v16  ;;  %v140_v24 = vmul.f32 %v124_v14, %v124_v14  ;;  %v96_v25 = vld [vmem:[%s585_s0 + $0x38] sm:$0xff]  ;;  %v155_v27 = vsel %vm80_vm0, %v137_v17, 0.0  ;;  %v141_v29 = vmul.f32 %v125_v18, %v125_v18 }
   0x8   :  { %v111_v22 = vld [vmem:[%s586_s1 + $0x30] sm:$0xff]  ;;  %v112_v26 = vld [vmem:[%s586_s1 + $0x38] sm:$0xff]  ;;  %v156_v30 = vsel %vm80_vm0, %v138_v19, 0.0  ;;  %v158_v31 = vsel %vm80_vm0, %v139_v20, 0.0  ;;  %v97_v32 = vld [vmem:[%s585_s0 + $0x40] sm:$0xff] }
   0x9   :  { %v127_v28 = vsub.f32 %v95_v21, %v111_v22  ;;  %v113_v33 = vld [vmem:[%s586_s1 + $0x40] sm:$0xff]  ;;  %v157_v34 = vadd.f32 %v156_v30, %v155_v27  ;;  %v128_v35 = vsub.f32 %v96_v25, %v112_v26  ;;  %v142_v36 = vmul.f32 %v126_v23, %v126_v23  ;;  %v98_v38 = vld [vmem:[%s585_s0 + $0x48] sm:$0xff]  ;;  %v99_v44 = vld [vmem:[%s585_s0 + $0x50] sm:$0xff] }
   0xa   :  { %v160_v37 = vsel %vm80_vm0, %v140_v24, 0.0  ;;  %v114_v39 = vld [vmem:[%s586_s1 + $0x48] sm:$0xff]  ;;  %v129_v41 = vsub.f32 %v97_v32, %v113_v33  ;;  %v162_v43 = vsel %vm80_vm0, %v141_v29, 0.0  ;;  %v115_v45 = vld [vmem:[%s586_s1 + $0x50] sm:$0xff]  ;;  %v100_v50 = vld [vmem:[%s585_s0 + $0x58] sm:$0xff] }
   0xb   :  { %v159_v40 = vadd.f32 %v158_v31, %v157_v34  ;;  %v143_v42 = vmul.f32 %v127_v28, %v127_v28  ;;  %v130_v47 = vsub.f32 %v98_v38, %v114_v39  ;;  %v144_v48 = vmul.f32 %v128_v35, %v128_v35  ;;  %v116_v51 = vld [vmem:[%s586_s1 + $0x58] sm:$0xff]  ;;  %v101_v56 = vld [vmem:[%s585_s0 + $0x60] sm:$0xff]  ;;  %v102_v62 = vld [vmem:[%s585_s0 + $0x68] sm:$0xff] }
   0xc   :  { %v164_v49 = vsel %vm80_vm0, %v142_v36, 0.0  ;;  %v131_v53 = vsub.f32 %v99_v44, %v115_v45  ;;  %v145_v54 = vmul.f32 %v129_v41, %v129_v41  ;;  %v117_v57 = vld [vmem:[%s586_s1 + $0x60] sm:$0xff]  ;;  %v132_v59 = vsub.f32 %v100_v50, %v116_v51  ;;  %v118_v63 = vld [vmem:[%s586_s1 + $0x68] sm:$0xff]  ;;  %v103_v4 = vld [vmem:[%s585_s0 + $0x70] sm:$0xff] }
   0xd   :  { %v161_v46 = vadd.f32 %v160_v37, %v159_v40  ;;  %v166_v55 = vsel %vm80_vm0, %v143_v42, 0.0  ;;  %v146_v60 = vmul.f32 %v130_v47, %v130_v47  ;;  %v168_v61 = vsel %vm80_vm0, %v144_v48, 0.0  ;;  %v119_v5 = vld [vmem:[%s586_s1 + $0x70] sm:$0xff]  ;;  %v104_v10 = vld [vmem:[%s585_s0 + $0x78] sm:$0xff]  ;;  %v153_v31 = vld [vmem:[#allocation2] sm:$0xff]  ;;  %s443_s0 = smov [#allocation2]  }
   0xe   :  { %v133_v1 = vsub.f32 %v101_v56, %v117_v57  ;;  %v147_v2 = vmul.f32 %v131_v53, %v131_v53  ;;  %v170_v3 = vsel %vm80_vm0, %v145_v54, 0.0  ;;  %v134_v7 = vsub.f32 %v102_v62, %v118_v63  ;;  %v120_v11 = vld [vmem:[%s586_s1 + $0x78] sm:$0xff]  ;;  %s396_s1 = sshll.u32 %s443_s0, 4  ;;  %s397_s1 = int_to_ptr.vmem [resolvable:$true] %s396_s1 }
   0xf   :  { %v163_v52 = vadd.f32 %v162_v43, %v161_v46  ;;  %v148_v8 = vmul.f32 %v132_v59, %v132_v59  ;;  %v172_v9 = vsel %vm80_vm0, %v146_v60, 0.0  ;;  %v135_v13 = vsub.f32 %v103_v4, %v119_v5  ;;  %s418_s17 = scalar_lea.vmem %s397_s1, 128  ;;  %p423_p1 = scmp.lt.s32.totalorder %s397_s1, %s397_s1 }
  0x10   :  { %v149_v14 = vmul.f32 %v133_v1, %v133_v1  ;;  %v174_v15 = vsel %vm80_vm0, %v147_v2, 0.0  ;;  %v136_v17 = vsub.f32 %v104_v10, %v120_v11  ;;  %v150_v18 = vmul.f32 %v134_v7, %v134_v7  ;;  %p419_p0 = scmp.ne.s32.totalorder %s397_s1, %s418_s17  ;;  %p424_p2 = scmp.lt.s32.totalorder %s418_s17, %s418_s17 }
  0x11   :  { %v165_v58 = vadd.f32 %v164_v49, %v163_v52  ;;  %v176_v19 = vsel %vm80_vm0, %v148_v8, 0.0  ;;  %v151_v21 = vmul.f32 %v135_v13, %v135_v13 }
  0x12   :  { %v178_v22 = vsel %vm80_vm0, %v149_v14, 0.0  ;;  %v152_v24 = vmul.f32 %v136_v17, %v136_v17  ;;  %v180_v25 = vsel %vm80_vm0, %v150_v18, 0.0  ;;  %p425_p3 = por %p424_p2, %p423_p1 }
  0x13   :  { %v167_v0 = vadd.f32 %v166_v55, %v165_v58  ;;  %v182_v27 = vsel %vm80_vm0, %v151_v21, 0.0 }
  0x14   :  { %v184_v29 = vsel %vm80_vm0, %v152_v24, 0.0  ;;  %p426_p4 = pnand %p425_p3, %p419_p0 }
  0x15   :  { %v169_v6 = vadd.f32 %v168_v61, %v167_v0 }
  0x17   :  { %v171_v12 = vadd.f32 %v170_v3, %v169_v6 }
  0x19   :  { %v173_v16 = vadd.f32 %v172_v9, %v171_v12 }
  0x1b   :  { %v175_v20 = vadd.f32 %v174_v15, %v173_v16 }
  0x1d   :  { %v177_v23 = vadd.f32 %v176_v19, %v175_v20 }
  0x1f   :  { %v179_v26 = vadd.f32 %v178_v22, %v177_v23 }
  0x21   :  { %v181_v28 = vadd.f32 %v180_v25, %v179_v26 }
  0x23   :  { %v183_v30 = vadd.f32 %v182_v27, %v181_v28 }
  0x25   :  { %v185_v32 = vadd.f32 %v184_v29, %v183_v30 }
  0x27   :  { %v186_v33 = vadd.f32 %v185_v32, %v153_v31 }
  0x29   :  { %187 = vst.msk [vmem:[#allocation2] sm:$0xff] %vm80_vm0, %v186_v33 }
  0x2a   :  { %429 = shalt.err (!%p426_p4)
}
  0x2b   :  { %s430_s20 = scalar_lea.hbm %s587_s2, 128 }
  0x2c   :  { %p431_p5 = scmp.ne.s32.totalorder %s587_s2, %s430_s20  ;;  %p434_p6 = scmp.lt.u32.totalorder %s430_s20, %s587_s2 }
  0x2e   :  { %p436_p7 = pnand %p434_p6, %p431_p5 }
  0x30   :  { %439 = shalt.err (!%p436_p7)
}
  0x31   :  { %399 = dma.vmem_to_hbm [thread:$0]  %s397_s1, 128, %s587_s2, [#allocation3]  }
  0x32   :  { %440 = dma.done.wait [#allocation3], 128  }
  0x33   :  { %441 = vsyncadd [#allocation3], 4294967168 }
  0x34   :  { %403 = vsyncpa [#allocation3], 1 }

</bundles_post_ra>
